<compile_context>
chip_gen: v6e
topology: v6e:2x2x1
jax: 0.10.0
libtpu: 0.0.40
codegen_flags: <defaults>
</compile_context>

<pallas_src>
import functools

import jax
import jax.numpy as jnp
from jax.experimental import pallas as pl
from jax.experimental.pallas import tpu as pltpu


# ----------------------------- Pallas kernel -------------------------------


def _conv_affine_prelu_kernel(p_ref, w_ref, prm_ref, o_ref, acc_ref):
    # p_ref:  (tm, tk)   bf16 patch tile
    # w_ref:  (tk, tn)   bf16 weight tile
    # prm_ref:(8, tn)    f32  rows: [scale, shift, alpha, 0...]
    # o_ref:  (tm, tn)   f32  output tile
    # acc_ref:(tm, tn)   f32  VMEM accumulator (persists across the K axis)
    k = pl.program_id(2)

    @pl.when(k == 0)
    def _():
        acc_ref[...] = jnp.zeros_like(acc_ref)

    acc_ref[...] += jnp.dot(p_ref[...], w_ref[...],
                            preferred_element_type=jnp.float32)

    @pl.when(k == pl.num_programs(2) - 1)
    def _():
        y = acc_ref[...]
        scale = prm_ref[0:1, :]
        shift = prm_ref[1:2, :]
        alpha = prm_ref[2:3, :]
        y = y * scale + shift                    # fused BN(eval) / bias
        y = jnp.where(y > 0, y, alpha * y)       # per-channel PReLU (alpha=1 => id)
        o_ref[...] = y.astype(o_ref.dtype)


# ------------------------------ JAX wrapper --------------------------------


def _to_pair(v):
    return (v, v) if isinstance(v, int) else tuple(v)


def _round_up(x, m):
    return ((x + m - 1) // m) * m


def conv_block_forward(
    x_nchw,
    weight,                               # [Cout, Cin, KH, KW] (PyTorch layout)
    bn_gamma, bn_beta, bn_mean, bn_var,   # [Cout] each
    prelu_alpha,                          # [Cout]
    *,
    stride, padding, dilation=(1, 1), group=1,
    bn_act=False, bias=None, eps=1e-5, tm=None,
):
    assert group == 1, "group > 1 not supported"
    sh, sw = _to_pair(stride)
    ph, pw = _to_pair(padding)
    dh, dw = _to_pair(dilation)

    N, Cin, H, W = x_nchw.shape
    Cout, Cin_w, KH, KW = weight.shape
    assert Cin_w == Cin

    OH = (H + 2 * ph - dh * (KH - 1) - 1) // sh + 1
    OW = (W + 2 * pw - dw * (KW - 1) - 1) // sw + 1

    K = KH * KW * Cin
    M = N * OH * OW
    K_pad = _round_up(K, 128)
    Cout_pad = _round_up(Cout, 128)
    tn = 256 if (Cout_pad % 256 == 0 and Cout_pad >= 256) else 128

    # K tiling: single step for small K, otherwise 512-wide reduction tiles.
    if K_pad <= 1024:
        tk = K_pad
    else:
        tk = 512
        K_pad = _round_up(K_pad, tk)

    # --- im2col (glue, plain JAX) -- cast to bf16 early to halve HBM traffic
    # TODO(synk): keep activations NHWC across layers to avoid per-call transposes.
    x = jnp.transpose(x_nchw, (0, 2, 3, 1)).astype(jnp.bfloat16)          # NHWC
    x = jnp.pad(x, ((0, 0), (ph, ph), (pw, pw), (0, 0)))
    patches = []
    for kh in range(KH):
        for kw in range(KW):
            h0 = kh * dh
            w0 = kw * dw
            sl = x[:, h0: h0 + (OH - 1) * sh + 1: sh,
                      w0: w0 + (OW - 1) * sw + 1: sw, :]                  # [N,OH,OW,Cin]
            patches.append(sl)
    p = jnp.concatenate(patches, axis=-1).reshape(M, K)                   # bf16 [M,K]

    # weight [Cout,Cin,KH,KW] -> [KH,KW,Cin,Cout] -> [K,Cout]  (matches patch order)
    w_mat = (jnp.transpose(weight, (2, 3, 1, 0))
             .reshape(K, Cout).astype(jnp.bfloat16))

    # --- tile sizing (M tile, VMEM-aware clamp) ---
    if tm is None:
        tm = max(8, min(1024, _round_up(M, 8)))
    tm = max(8, (tm // 8) * 8)

    def _vmem_bytes(tm_):
        return (2 * tm_ * tk * 2        # patch tiles (bf16, double-buffered)
                + 2 * tk * tn * 2       # weight tiles (bf16)
                + 2 * 8 * tn * 4        # param tiles  (f32)
                + 2 * tm_ * tn * 4      # output tiles (f32)
                + tm_ * tn * 4)         # accumulator scratch (f32)

    budget = 32 * 1024 * 1024
    while tm > 8 and _vmem_bytes(tm) > budget:
        tm = max(8, (tm // 2 // 8) * 8)

    M_pad = _round_up(M, tm)

    # --- pad operands to aligned shapes (zeros contribute 0 to the matmul) ---
    p = jnp.pad(p, ((0, M_pad - M), (0, K_pad - K)))
    w_mat = jnp.pad(w_mat, ((0, K_pad - K), (0, Cout_pad - Cout)))

    # --- per-channel affine params: scale / shift / alpha in one array ---
    if bn_act:
        scale = bn_gamma / jnp.sqrt(bn_var + eps)                         # [Cout]
        shift = bn_beta - bn_mean * scale
        if bias is not None:
            shift = shift + scale * bias
        alpha = prelu_alpha
    else:
        scale = jnp.ones((Cout,), jnp.float32)
        shift = bias if bias is not None else jnp.zeros((Cout,), jnp.float32)
        alpha = jnp.ones((Cout,), jnp.float32)        # alpha=1 => PReLU is identity

    prm = jnp.zeros((8, Cout_pad), jnp.float32)
    prm = prm.at[0, :Cout].set(scale.astype(jnp.float32))
    prm = prm.at[1, :Cout].set(shift.astype(jnp.float32))
    prm = prm.at[2, :Cout].set(alpha.astype(jnp.float32))

    # --- pallas call ---
    grid = (M_pad // tm, Cout_pad // tn, K_pad // tk)
    out_shape = jax.ShapeDtypeStruct((M_pad, Cout_pad), jnp.float32)

    p_spec = pl.BlockSpec((tm, tk), lambda i, j, k: (i, k))
    w_spec = pl.BlockSpec((tk, tn), lambda i, j, k: (k, j))
    prm_spec = pl.BlockSpec((8, tn), lambda i, j, k: (0, j))
    o_spec = pl.BlockSpec((tm, tn), lambda i, j, k: (i, j))

    cparams = pltpu.CompilerParams(
        dimension_semantics=("parallel", "parallel", "arbitrary"),
        vmem_limit_bytes=64 * 1024 * 1024,
    )
    cost = pl.CostEstimate(
        flops=2 * M_pad * K_pad * Cout_pad,
        transcendentals=0,
        bytes_accessed=int(p.size * 2 + w_mat.size * 2 + prm.size * 4
                           + M_pad * Cout_pad * 4),
    )

    out_mat = pl.pallas_call(
        _conv_affine_prelu_kernel,
        out_shape=out_shape,
        grid=grid,
        in_specs=[p_spec, w_spec, prm_spec],
        out_specs=o_spec,
        scratch_shapes=[pltpu.VMEM((tm, tn), jnp.float32)],
        compiler_params=cparams,
        cost_estimate=cost,
    )(p, w_mat, prm)

    out = out_mat[:M, :Cout].reshape(N, OH, OW, Cout)
    return jnp.transpose(out, (0, 3, 1, 2))                               # back to NCHW


# ------------------------------- reference ---------------------------------


def _reference(x, weight, gamma, beta, mean, var, alpha, *, stride, padding,
               dilation, bn_act, bias=None, eps=1e-5):
    # Quantize inputs to bf16 (as the kernel does) so only accumulation differs.
    sh, sw = _to_pair(stride)
    ph, pw = _to_pair(padding)
    dh, dw = _to_pair(dilation)
    xq = x.astype(jnp.bfloat16).astype(jnp.float32)
    wq = weight.astype(jnp.bfloat16).astype(jnp.float32)
    y = jax.lax.conv_general_dilated(
        xq, wq, window_strides=(sh, sw),
        padding=((ph, ph), (pw, pw)), rhs_dilation=(dh, dw),
        dimension_numbers=("NCHW", "OIHW", "NCHW"),
        precision=jax.lax.Precision.HIGHEST)
    if not bn_act:
        if bias is not None:
            y = y + bias.reshape(1, -1, 1, 1)
        return y
    scale = (gamma / jnp.sqrt(var + eps)).reshape(1, -1, 1, 1)
    shift = (beta - mean * gamma / jnp.sqrt(var + eps)).reshape(1, -1, 1, 1)
    if bias is not None:
        shift = shift + scale * bias.reshape(1, -1, 1, 1)
    y = y * scale + shift
    a = alpha.reshape(1, -1, 1, 1)
    return jnp.where(y > 0, y, a * y)


# --------------------------------- main -------------------------------------


if __name__ == "__main__":
    key = jax.random.PRNGKey(0)
    k_x, k_w, k_g, k_b, k_m, k_v, k_bias = jax.random.split(key, 7)

    N, Cin, H, W = 2, 4, 16, 16
    Cout, KH, KW = 8, 3, 3
    stride, padding, dilation = (1, 1), (1, 1), (1, 1)

    x = jax.random.normal(k_x, (N, Cin, H, W), dtype=jnp.float32)
    weight = 0.1 * jax.random.normal(k_w, (Cout, Cin, KH, KW), dtype=jnp.float32)
    bn_gamma = 1.0 + 0.1 * jax.random.normal(k_g, (Cout,), dtype=jnp.float32)
    bn_beta = 0.1 * jax.random.normal(k_b, (Cout,), dtype=jnp.float32)
    bn_mean = 0.1 * jax.random.normal(k_m, (Cout,), dtype=jnp.float32)
    bn_var = jnp.abs(jax.random.normal(k_v, (Cout,), dtype=jnp.float32)) + 0.5
    prelu_alpha = jnp.full((Cout,), 0.25, dtype=jnp.float32)   # PyTorch PReLU init
    conv_bias = 0.1 * jax.random.normal(k_bias, (Cout,), dtype=jnp.float32)

    fwd = functools.partial(
        conv_block_forward,
        stride=stride, padding=padding, dilation=dilation,
    )

    # bn_act=True path: conv -> BN(eval) -> PReLU
    out_bn = fwd(x, weight, bn_gamma, bn_beta, bn_mean, bn_var, prelu_alpha,
                 bn_act=True)
    out_bn = jax.block_until_ready(out_bn)

    # bn_act=False path: conv only
    out_conv = fwd(x, weight, bn_gamma, bn_beta, bn_mean, bn_var, prelu_alpha,
                   bn_act=False)
    out_conv = jax.block_until_ready(out_conv)

    # bn_act=False with fused bias
    out_conv_b = fwd(x, weight, bn_gamma, bn_beta, bn_mean, bn_var, prelu_alpha,
                     bn_act=False, bias=conv_bias)
    out_conv_b = jax.block_until_ready(out_conv_b)

    # sanity check against pure-JAX reference (bf16-quantized inputs)
    ref_bn = _reference(x, weight, bn_gamma, bn_beta, bn_mean, bn_var,
                        prelu_alpha, stride=stride, padding=padding,
                        dilation=dilation, bn_act=True)
    ref_conv = _reference(x, weight, bn_gamma, bn_beta, bn_mean, bn_var,
                          prelu_alpha, stride=stride, padding=padding,
                          dilation=dilation, bn_act=False)
    ref_conv_b = _reference(x, weight, bn_gamma, bn_beta, bn_mean, bn_var,
                            prelu_alpha, stride=stride, padding=padding,
                            dilation=dilation, bn_act=False, bias=conv_bias)

    assert out_bn.shape == (N, Cout, H, W)
    assert jnp.allclose(out_bn, ref_bn, atol=1e-2, rtol=1e-2)
    assert jnp.allclose(out_conv, ref_conv, atol=1e-2, rtol=1e-2)
    assert jnp.allclose(out_conv_b, ref_conv_b, atol=1e-2, rtol=1e-2)

    # Larger-Cin case to exercise the multi-step K accumulation path.
    k2_x, k2_w, k2_g, k2_b, k2_m, k2_v = jax.random.split(jax.random.PRNGKey(1), 6)
    N2, Cin2, H2, W2, Cout2 = 1, 128, 8, 8, 16
    x2 = jax.random.normal(k2_x, (N2, Cin2, H2, W2), dtype=jnp.float32)
    w2 = 0.05 * jax.random.normal(k2_w, (Cout2, Cin2, 3, 3), dtype=jnp.float32)
    g2 = 1.0 + 0.1 * jax.random.normal(k2_g, (Cout2,), dtype=jnp.float32)
    b2 = 0.1 * jax.random.normal(k2_b, (Cout2,), dtype=jnp.float32)
    m2 = 0.1 * jax.random.normal(k2_m, (Cout2,), dtype=jnp.float32)
    v2 = jnp.abs(jax.random.normal(k2_v, (Cout2,), dtype=jnp.float32)) + 0.5
    a2 = jnp.full((Cout2,), 0.25, dtype=jnp.float32)
    out_big = conv_block_forward(x2, w2, g2, b2, m2, v2, a2,
                                 stride=(1, 1), padding=(1, 1),
                                 dilation=(1, 1), bn_act=True)
    out_big = jax.block_until_ready(out_big)
    ref_big = _reference(x2, w2, g2, b2, m2, v2, a2, stride=(1, 1),
                         padding=(1, 1), dilation=(1, 1), bn_act=True)
    assert out_big.shape == (N2, Cout2, H2, W2)
    assert jnp.allclose(out_big, ref_big, atol=2e-2, rtol=2e-2)

    print("KERNEL_OK")
</pallas_src>

<mosaic_0001>
module attributes {stable_mosaic.version = 11 : i64} {
  func.func @_conv_affine_prelu_kernel(%arg0: i32, %arg1: i32, %arg2: i32, %arg3: memref<512x128xbf16, #tpu.memory_space<vmem>>, %arg4: memref<128x128xbf16, #tpu.memory_space<vmem>>, %arg5: memref<8x128xf32, #tpu.memory_space<vmem>>, %arg6: memref<512x128xf32, #tpu.memory_space<vmem>>, %arg7: memref<512x128xf32, #tpu.memory_space<vmem>>) attributes {dimension_semantics = [#tpu.dimension_semantics<parallel>, #tpu.dimension_semantics<parallel>, #tpu.dimension_semantics<arbitrary>], iteration_bounds = array<i64: 1, 1, 1>, scalar_prefetch = 0 : i64, scratch_operands = 1 : i64, tpu.core_type = #tpu.core_type<tc>, window_params = [{transform_indices = @transform_0, window_bounds = array<i64: 512, 128>}, {transform_indices = @transform_1, window_bounds = array<i64: 128, 128>}, {transform_indices = @transform_2, window_bounds = array<i64: 8, 128>}, {transform_indices = @transform_3, window_bounds = array<i64: 512, 128>}]} {
    %c0_i32 = arith.constant 0 : i32
    %0 = arith.cmpi eq, %arg2, %c0_i32 : i32
    %1 = arith.extui %0 : i1 to i32
    %c0_i32_0 = arith.constant 0 : i32
    %2 = arith.cmpi ne, %1, %c0_i32_0 : i32
    scf.if %2 {
      %cst_10 = arith.constant 0.000000e+00 : f32
      %12 = vector.broadcast %cst_10 : f32 to vector<512x128xf32>
      %c0_11 = arith.constant 0 : index
      %c0_12 = arith.constant 0 : index
      %13 = vector.load %arg7[%c0_11, %c0_12] : memref<512x128xf32, #tpu.memory_space<vmem>>, vector<512x128xf32>
      tpu.vector_store %arg7[%c0_11, %c0_12], %12 {strides = array<i32>} : memref<512x128xf32, #tpu.memory_space<vmem>>, vector<512x128xf32>,
    } else {
    }
    %c0 = arith.constant 0 : index
    %c0_1 = arith.constant 0 : index
    %3 = vector.load %arg7[%c0, %c0_1] : memref<512x128xf32, #tpu.memory_space<vmem>>, vector<512x128xf32>
    %c0_2 = arith.constant 0 : index
    %c0_3 = arith.constant 0 : index
    %4 = vector.load %arg3[%c0_2, %c0_3] : memref<512x128xbf16, #tpu.memory_space<vmem>>, vector<512x128xbf16>
    %c0_4 = arith.constant 0 : index
    %c0_5 = arith.constant 0 : index
    %5 = vector.load %arg4[%c0_4, %c0_5] : memref<128x128xbf16, #tpu.memory_space<vmem>>, vector<128x128xbf16>
    %cst = arith.constant dense<0.000000e+00> : vector<512x128xf32>
    %6 = tpu.matmul %4, %5, %cst {dimension_numbers = #tpu.dot_dimension_numbers<[1], [0], [0], [1], [0, 0, 1, 1], [], []>} : vector<512x128xbf16>, vector<128x128xbf16>, vector<512x128xf32> -> vector<512x128xf32>
    %7 = arith.addf %3, %6 : vector<512x128xf32>
    %c0_6 = arith.constant 0 : index
    %c0_7 = arith.constant 0 : index
    %8 = vector.load %arg7[%c0_6, %c0_7] : memref<512x128xf32, #tpu.memory_space<vmem>>, vector<512x128xf32>
    tpu.vector_store %arg7[%c0_6, %c0_7], %7 {strides = array<i32>} : memref<512x128xf32, #tpu.memory_space<vmem>>, vector<512x128xf32>,
    %c0_i32_8 = arith.constant 0 : i32
    %9 = arith.cmpi eq, %arg2, %c0_i32_8 : i32
    %10 = arith.extui %9 : i1 to i32
    %c0_i32_9 = arith.constant 0 : i32
    %11 = arith.cmpi ne, %10, %c0_i32_9 : i32
    scf.if %11 {
      %c0_10 = arith.constant 0 : index
      %c0_11 = arith.constant 0 : index
      %12 = vector.load %arg7[%c0_10, %c0_11] : memref<512x128xf32, #tpu.memory_space<vmem>>, vector<512x128xf32>
      %c0_12 = arith.constant 0 : index
      %c0_13 = arith.constant 0 : index
      %13 = vector.load %arg5[%c0_12, %c0_13] : memref<8x128xf32, #tpu.memory_space<vmem>>, vector<1x128xf32>
      %c1 = arith.constant 1 : index
      %c0_14 = arith.constant 0 : index
      %14 = vector.load %arg5[%c1, %c0_14] : memref<8x128xf32, #tpu.memory_space<vmem>>, vector<1x128xf32>
      %c2 = arith.constant 2 : index
      %c0_15 = arith.constant 0 : index
      %15 = vector.load %arg5[%c2, %c0_15] : memref<8x128xf32, #tpu.memory_space<vmem>>, vector<1x128xf32>
      %16 = vector.broadcast %13 : vector<1x128xf32> to vector<512x128xf32>
      %17 = arith.mulf %12, %16 : vector<512x128xf32>
      %18 = vector.broadcast %14 : vector<1x128xf32> to vector<512x128xf32>
      %19 = arith.addf %17, %18 : vector<512x128xf32>
      %cst_16 = arith.constant 0.000000e+00 : f32
      %20 = vector.broadcast %cst_16 : f32 to vector<512x128xf32>
      %21 = arith.cmpf ogt, %19, %20 : vector<512x128xf32>
      %22 = vector.broadcast %15 : vector<1x128xf32> to vector<512x128xf32>
      %23 = arith.mulf %22, %19 : vector<512x128xf32>
      %24 = arith.select %21, %19, %23 : vector<512x128xi1>, vector<512x128xf32>
      %c0_17 = arith.constant 0 : index
      %c0_18 = arith.constant 0 : index
      %25 = vector.load %arg6[%c0_17, %c0_18] : memref<512x128xf32, #tpu.memory_space<vmem>>, vector<512x128xf32>
      tpu.vector_store %arg6[%c0_17, %c0_18], %24 {strides = array<i32>} : memref<512x128xf32, #tpu.memory_space<vmem>>, vector<512x128xf32>,
    } else {
    }
    return
  }
  func.func @transform_0(%arg0: i32, %arg1: i32, %arg2: i32) -> (i32, i32) {
    %c0_i32 = arith.constant 0 : i32
    return %arg0, %arg2 : i32, i32
  }
  func.func @transform_1(%arg0: i32, %arg1: i32, %arg2: i32) -> (i32, i32) {
    %c0_i32 = arith.constant 0 : i32
    return %arg2, %arg1 : i32, i32
  }
  func.func @transform_2(%arg0: i32, %arg1: i32, %arg2: i32) -> (i32, i32) {
    %c0_i32 = arith.constant 0 : i32
    %c0_i32_0 = arith.constant 0 : i32
    return %c0_i32, %arg1 : i32, i32
  }
  func.func @transform_3(%arg0: i32, %arg1: i32, %arg2: i32) -> (i32, i32) {
    %c0_i32 = arith.constant 0 : i32
    return %arg0, %arg1 : i32, i32
  }
}

</mosaic_0001>

<bundles_post_ra>
// kernel: tpu_custom_call.1
= control target key start
LH: loop header
LB: loop body
LE: loop exit
PB: predicated region body
PF: predicated region fallthrough
CT: control target
= control target key end

     0   :  { %8 = vsyncpa [#allocation4], 0  ;;  %s1980_s0 = inlined_call_operand.hbm [shape: bf16[512,128], index: 0, kind: input, shape index: {}]   ;;  %s1981_s1 = inlined_call_operand.hbm [shape: bf16[128,128], index: 1, kind: input, shape index: {}]   ;;  %s1982_s2 = inlined_call_operand.hbm [shape: f32[8,128], index: 2, kind: input, shape index: {}]   ;;  %s1983_s3 = inlined_call_operand.hbm [shape: f32[512,128], index: 3, kind: output, shape index: {}]  }
   0x1   :  { %9 = vsyncpa [#allocation7], 0 }
   0x2   :  { %10 = vsyncpa [#allocation5], 0  ;;  %s1721_s12 = smov [#allocation6]   ;;  %s1722_s14 = smov [#allocation3]  }
   0x3   :  { %s28_s13 = sshll.u32 %s1721_s12, 4  ;;  %s16_s15 = sshll.u32 %s1722_s14, 4  ;;  %s29_s13 = int_to_ptr.vmem [resolvable:$true] %s28_s13  ;;  %s17_s15 = int_to_ptr.vmem [resolvable:$true] %s16_s15 }
   0x4   :  { %s1643_s16 = scalar_lea.vmem %s29_s13, 1024  ;;  %p1648_p1 = scmp.lt.s32.totalorder %s29_s13, %s29_s13 }
   0x5   :  { %p1644_p0 = scmp.ne.s32.totalorder %s29_s13, %s1643_s16  ;;  %p1649_p2 = scmp.lt.s32.totalorder %s1643_s16, %s1643_s16 }
   0x7   :  { %p1650_p3 = por %p1649_p2, %p1648_p1 }
   0x9   :  { %p1651_p4 = pnand %p1650_p3, %p1644_p0 }
   0xb   :  { %1654 = shalt.err (!%p1651_p4)
}
   0xc   :  { %s1723_s17 = smov 64   ;;  %s1724_s18 = smov 4  }
   0xd   :  { %34 = dma.hbm_to_vmem [thread:$0]  %s1981_s1, 1024, %s29_s13, [#allocation7], %s1723_s17, %s1723_s17, %s1724_s18  }
   0xe   :  { %s1663_s21 = scalar_lea.vmem %s17_s15, 4096  ;;  %p1668_p6 = scmp.lt.s32.totalorder %s17_s15, %s17_s15 }
   0xf   :  { %p1664_p5 = scmp.ne.s32.totalorder %s17_s15, %s1663_s21  ;;  %p1669_p7 = scmp.lt.s32.totalorder %s1663_s21, %s1663_s21 }
  0x11   :  { %p1670_p8 = por %p1669_p7, %p1668_p6 }
  0x13   :  { %p1671_p9 = pnand %p1670_p8, %p1664_p5 }
  0x15   :  { %1674 = shalt.err (!%p1671_p9)
}
  0x16   :  { %22 = dma.hbm_to_vmem [thread:$0]  %s1980_s0, 4096, %s17_s15, [#allocation4], %s1723_s17, %s1723_s17, %s1724_s18  }
  0x17   :  { %s1725_s24 = smov [#allocation8]  }
  0x18   :  { %s41_s25 = sshll.u32 %s1725_s24, 4  ;;  %s42_s25 = int_to_ptr.vmem [resolvable:$true] %s41_s25 }
  0x19   :  { %s1683_s26 = scalar_lea.vmem %s42_s25, 128  ;;  %p1688_p11 = scmp.lt.s32.totalorder %s42_s25, %s42_s25 }
  0x1a   :  { %p1684_p10 = scmp.ne.s32.totalorder %s42_s25, %s1683_s26  ;;  %p1689_p12 = scmp.lt.s32.totalorder %s1683_s26, %s1683_s26 }
  0x1c   :  { %p1690_p13 = por %p1689_p12, %p1688_p11 }
  0x1e   :  { %p1691_p0 = pnand %p1690_p13, %p1684_p10 }
  0x20   :  { %1694 = shalt.err (!%p1691_p0)
}
  0x21   :  { %44 = dma.hbm_to_vmem [thread:$0]  %s1982_s2, 128, %s42_s25, [#allocation7]  }
  0x22   :  { %1715 = dma.done.wait [#allocation4], 4096  }
  0x23   :  { %1716 = vsyncadd [#allocation4], 4294963200 }
  0x24   :  { %1717 = dma.done.wait [#allocation7], 1152  }
  0x25   :  { %1718 = vsyncadd [#allocation7], 4294966144  ;;  %v1595_v0 = vld [vmem:[#allocation6 + $0x38] sm:$0xff]   ;;  %v1596_v1 = vld [vmem:[#allocation6 + $0x30] sm:$0xff]   ;;  %s1726_s0 = smov [#allocation9]  }
  0x26   :  { %1491 = vmatprep.subr.bf16.mxu0 %v1595_v0  ;;  %1571 = vmatprep.subr.bf16.mxu1 %v1595_v0  ;;  %v1597_v2 = vld [vmem:[#allocation6 + $0x28] sm:$0xff]   ;;  %v1598_v3 = vld [vmem:[#allocation6 + $0x20] sm:$0xff]   ;;  %v1599_v6 = vld [vmem:[#allocation6 + $0x18] sm:$0xff]   ;;  %s1395_s2 = sshll.u32 %s1726_s0, 4  ;;  %s1396_s2 = int_to_ptr.vmem [resolvable:$true] %s1395_s2 }
  0x27   :  { %1492 = vmatpush3.bf16.msra.mxu0 %v1595_v0  ;;  %1579 = vmatpush3.bf16.msra.mxu1 %v1595_v0  ;;  %v1603_v4 = vld [vmem:[#allocation3] sm:$0xff]   ;;  %v1600_v7 = vld [vmem:[#allocation6 + $0x10] sm:$0xff]   ;;  %v1601_v8 = vld [vmem:[#allocation6 + $0x8] sm:$0xff]   ;;  %s1695_s28 = scalar_lea.vmem %s1396_s2, 8192  ;;  %p1700_p2 = scmp.lt.s32.totalorder %s1396_s2, %s1396_s2 }
  0x28   :  { %1493 = vmatprep.subr.bf16.mxu0 %v1596_v1  ;;  %1572 = vmatprep.subr.bf16.mxu1 %v1596_v1  ;;  %v1604_v5 = vld [vmem:[#allocation3 + $0x80] sm:$0xff]   ;;  %v1605_v10 = vld [vmem:[#allocation3 + $0x8] sm:$0xff]   ;;  %v1607_v12 = vld [vmem:[#allocation3 + $0x10] sm:$0xff]   ;;  %p1696_p1 = scmp.ne.s32.totalorder %s1396_s2, %s1695_s28  ;;  %p1701_p3 = scmp.lt.s32.totalorder %s1695_s28, %s1695_s28 }
  0x29   :  { %1507 = vmatprep.mubr.bf16.mxu0 %v1603_v4  ;;  %1539 = vmatprep.mubr.bf16.mxu1 %v1604_v5  ;;  %v1602_v9 = vld [vmem:[#allocation6] sm:$0xff]   ;;  %v1606_v11 = vld [vmem:[#allocation3 + $0x88] sm:$0xff]   ;;  %v1608_v13 = vld [vmem:[#allocation3 + $0x90] sm:$0xff]  }
  0x2a   :  { %v1609_v14 = vld [vmem:[#allocation3 + $0x18] sm:$0xff]   ;;  %v1611_v16 = vld [vmem:[#allocation3 + $0x20] sm:$0xff]   ;;  %v1613_v18 = vld [vmem:[#allocation3 + $0x28] sm:$0xff]   ;;  %p1702_p4 = por %p1701_p3, %p1700_p2 }
  0x2b   :  { %1494 = vmatpush3.bf16.msra.mxu0 %v1596_v1  ;;  %1580 = vmatpush3.bf16.msra.mxu1 %v1596_v1  ;;  %v1610_v15 = vld [vmem:[#allocation3 + $0x98] sm:$0xff]   ;;  %v1612_v17 = vld [vmem:[#allocation3 + $0xa0] sm:$0xff]   ;;  %v1614_v19 = vld [vmem:[#allocation3 + $0xa8] sm:$0xff]  }
  0x2c   :  { %1495 = vmatprep.subr.bf16.mxu0 %v1597_v2  ;;  %1573 = vmatprep.subr.bf16.mxu1 %v1597_v2  ;;  %v1615_v20 = vld [vmem:[#allocation3 + $0x30] sm:$0xff]   ;;  %v1617_v22 = vld [vmem:[#allocation3 + $0x38] sm:$0xff]   ;;  %v1619_v24 = vld [vmem:[#allocation3 + $0x40] sm:$0xff]   ;;  %p1703_p5 = pnand %p1702_p4, %p1696_p1 }
  0x2d   :  { %v1616_v21 = vld [vmem:[#allocation3 + $0xb0] sm:$0xff]   ;;  %v1618_v23 = vld [vmem:[#allocation3 + $0xb8] sm:$0xff]   ;;  %v1620_v25 = vld [vmem:[#allocation3 + $0xc0] sm:$0xff]  }
  0x2e   :  { %v1621_v26 = vld [vmem:[#allocation3 + $0x48] sm:$0xff]   ;;  %v1623_v28 = vld [vmem:[#allocation3 + $0x50] sm:$0xff]   ;;  %v1625_v30 = vld [vmem:[#allocation3 + $0x58] sm:$0xff]  }
  0x2f   :  { %1496 = vmatpush3.bf16.msra.mxu0 %v1597_v2  ;;  %1581 = vmatpush3.bf16.msra.mxu1 %v1597_v2  ;;  %v1622_v27 = vld [vmem:[#allocation3 + $0xc8] sm:$0xff]   ;;  %v1624_v29 = vld [vmem:[#allocation3 + $0xd0] sm:$0xff]   ;;  %v1626_v31 = vld [vmem:[#allocation3 + $0xd8] sm:$0xff]  }
  0x30   :  { %1497 = vmatprep.subr.bf16.mxu0 %v1598_v3  ;;  %1574 = vmatprep.subr.bf16.mxu1 %v1598_v3  ;;  %v1627_v32 = vld [vmem:[#allocation3 + $0x60] sm:$0xff]   ;;  %v1629_v34 = vld [vmem:[#allocation3 + $0x68] sm:$0xff]   ;;  %v1631_v36 = vld [vmem:[#allocation3 + $0x70] sm:$0xff]  }
  0x31   :  { %v1628_v33 = vld [vmem:[#allocation3 + $0xe0] sm:$0xff]   ;;  %v1630_v35 = vld [vmem:[#allocation3 + $0xe8] sm:$0xff]   ;;  %v1632_v37 = vld [vmem:[#allocation3 + $0xf0] sm:$0xff]  }
  0x32   :  { %v1633_v38 = vld [vmem:[#allocation3 + $0x78] sm:$0xff]   ;;  %v1758_v40 = vld [vmem:[#allocation8] ss:$0 sm:$0xff]  ;;  %v1760_v42 = vld [vmem:[#allocation8 + $0x1] ss:$0 sm:$0xff] }
  0x33   :  { %1498 = vmatpush3.bf16.msra.mxu0 %v1598_v3  ;;  %1582 = vmatpush3.bf16.msra.mxu1 %v1598_v3  ;;  %v1634_v39 = vld [vmem:[#allocation3 + $0xf8] sm:$0xff]   ;;  %v1764_v46 = vld [vmem:[#allocation8 + $0x2] ss:$0 sm:$0xff] }
  0x34   :  { %1499 = vmatprep.subr.bf16.mxu0 %v1599_v6  ;;  %1575 = vmatprep.subr.bf16.mxu1 %v1599_v6 }
  0x37   :  { %1500 = vmatpush3.bf16.msra.mxu0 %v1599_v6  ;;  %1583 = vmatpush3.bf16.msra.mxu1 %v1599_v6 }
  0x38   :  { %1501 = vmatprep.subr.bf16.mxu0 %v1600_v7  ;;  %1576 = vmatprep.subr.bf16.mxu1 %v1600_v7 }
  0x3b   :  { %1502 = vmatpush3.bf16.msra.mxu0 %v1600_v7  ;;  %1584 = vmatpush3.bf16.msra.mxu1 %v1600_v7 }
  0x3c   :  { %1503 = vmatprep.subr.bf16.mxu0 %v1601_v8  ;;  %1577 = vmatprep.subr.bf16.mxu1 %v1601_v8 }
  0x3f   :  { %1504 = vmatpush3.bf16.msra.mxu0 %v1601_v8  ;;  %1585 = vmatpush3.bf16.msra.mxu1 %v1601_v8 }
  0x40   :  { %1505 = vmatprep.subr.bf16.mxu0 %v1602_v9  ;;  %1578 = vmatprep.subr.bf16.mxu1 %v1602_v9 }
  0x43   :  { %1506 = vmatpush3.bf16.msra.mxu0 %v1602_v9  ;;  %1586 = vmatpush3.bf16.msra.mxu1 %v1602_v9 }
  0x46   :  { %1508 = vmatmul.mubr.bf16.vlgmr.msra.gmra.mxu0 %v1605_v10  ;;  %1540 = vmatmul.mubr.bf16.vlgmr.msra.gmra.mxu1 %v1606_v11 }
  0x47   :  { %1511 = vmatprep.mubr.bf16.mxu0 %v1607_v12  ;;  %1543 = vmatprep.mubr.bf16.mxu1 %v1608_v13 }
  0x4e   :  { %1512 = vmatmul.mubr.bf16.gmra.mxu0 %v1609_v14  ;;  %1544 = vmatmul.mubr.bf16.gmra.mxu1 %v1610_v15 }
  0x4f   :  { %1515 = vmatprep.mubr.bf16.mxu0 %v1611_v16  ;;  %1547 = vmatprep.mubr.bf16.mxu1 %v1612_v17 }
  0x56   :  { %1516 = vmatmul.mubr.bf16.gmra.mxu0 %v1613_v18  ;;  %1548 = vmatmul.mubr.bf16.gmra.mxu1 %v1614_v19 }
  0x57   :  { %1519 = vmatprep.mubr.bf16.mxu0 %v1615_v20  ;;  %1551 = vmatprep.mubr.bf16.mxu1 %v1616_v21 }
  0x5e   :  { %1520 = vmatmul.mubr.bf16.gmra.mxu0 %v1617_v22  ;;  %1552 = vmatmul.mubr.bf16.gmra.mxu1 %v1618_v23 }
  0x5f   :  { %1523 = vmatprep.mubr.bf16.mxu0 %v1619_v24  ;;  %1555 = vmatprep.mubr.bf16.mxu1 %v1620_v25 }
  0x66   :  { %1524 = vmatmul.mubr.bf16.gmra.mxu0 %v1621_v26  ;;  %1556 = vmatmul.mubr.bf16.gmra.mxu1 %v1622_v27 }
  0x67   :  { %1527 = vmatprep.mubr.bf16.mxu0 %v1623_v28  ;;  %1559 = vmatprep.mubr.bf16.mxu1 %v1624_v29 }
  0x6e   :  { %1528 = vmatmul.mubr.bf16.gmra.mxu0 %v1625_v30  ;;  %1560 = vmatmul.mubr.bf16.gmra.mxu1 %v1626_v31 }
  0x6f   :  { %1531 = vmatprep.mubr.bf16.mxu0 %v1627_v32  ;;  %1563 = vmatprep.mubr.bf16.mxu1 %v1628_v33 }
  0x76   :  { %1532 = vmatmul.mubr.bf16.gmra.mxu0 %v1629_v34  ;;  %1564 = vmatmul.mubr.bf16.gmra.mxu1 %v1630_v35 }
  0x77   :  { %1535 = vmatprep.mubr.bf16.mxu0 %v1631_v36  ;;  %1567 = vmatprep.mubr.bf16.mxu1 %v1632_v37 }
  0x7e   :  { %1536 = vmatmul.mubr.bf16.gmra.mxu0 %v1633_v38  ;;  %1568 = vmatmul.mubr.bf16.gmra.mxu1 %v1634_v39 }
 0x106   :  { %v1509_v41 = vpop.f32.mrf.mxu0  ;;  %v1541_v43 = vpop.f32.mrf.mxu1 }
 0x107   :  { %v1000_v44 = vmul.f32 %v1509_v41, %v1758_v40  ;;  %v1032_v45 = vmul.f32 %v1541_v43, %v1758_v40 }
 0x108   :  { %v541_v47 = vpop.f32.mrf.mxu0  ;;  %v669_v48 = vpop.f32.mrf.mxu1 }
 0x109   :  { %v1068_v49 = vadd.f32 %v1760_v42, %v1000_v44  ;;  %v1100_v50 = vadd.f32 %v1760_v42, %v1032_v45  ;;  %v998_v51 = vmul.f32 %v1758_v40, %v541_v47  ;;  %v1030_v52 = vmul.f32 %v1758_v40, %v669_v48 }
 0x10a   :  { %v1510_v53 = vpop.f32.mrf.mxu0  ;;  %v1542_v54 = vpop.f32.mrf.mxu1 }
 0x10b   :  { %vm1132_vm0 = vcmp.gt.f32.partialorder %v1068_v49, 0.0  ;;  %v1200_v55 = vmul.f32 %v1764_v46, %v1068_v49  ;;  %vm1164_vm1 = vcmp.gt.f32.partialorder %v1100_v50, 0.0  ;;  %v1232_v56 = vmul.f32 %v1764_v46, %v1100_v50 }
 0x10c   :  { %v1066_v57 = vadd.f32 %v1760_v42, %v998_v51  ;;  %v1098_v58 = vadd.f32 %v1760_v42, %v1030_v52  ;;  %v1001_v59 = vmul.f32 %v1510_v53, %v1758_v40  ;;  %v1033_v60 = vmul.f32 %v1542_v54, %v1758_v40  ;;  %v544_v61 = vpop.f32.mrf.mxu0  ;;  %v672_v62 = vpop.f32.mrf.mxu1 }
 0x10d   :  { %v1264_v63 = vsel %vm1132_vm0, %v1068_v49, %v1200_v55  ;;  %v1296_v0 = vsel %vm1164_vm1, %v1100_v50, %v1232_v56  ;;  %v999_v1 = vmul.f32 %v1758_v40, %v544_v61  ;;  %v1031_v2 = vmul.f32 %v1758_v40, %v672_v62 }
 0x10e   :  { %1328 = vst [vmem:[#allocation9 + $0x10] sm:$0xff] %v1264_v63  ;;  %1360 = vst [vmem:[#allocation9 + $0x110] sm:$0xff] %v1296_v0  ;;  %vm1130_vm2 = vcmp.gt.f32.partialorder %v1066_v57, 0.0  ;;  %v1198_v3 = vmul.f32 %v1764_v46, %v1066_v57  ;;  %vm1162_vm3 = vcmp.gt.f32.partialorder %v1098_v58, 0.0  ;;  %v1230_v4 = vmul.f32 %v1764_v46, %v1098_v58  ;;  %v1513_v5 = vpop.f32.mrf.mxu0  ;;  %v1545_v6 = vpop.f32.mrf.mxu1 }
 0x10f   :  { %v1069_v7 = vadd.f32 %v1760_v42, %v1001_v59  ;;  %v1101_v8 = vadd.f32 %v1760_v42, %v1033_v60  ;;  %v1067_v9 = vadd.f32 %v1760_v42, %v999_v1  ;;  %v1099_v10 = vadd.f32 %v1760_v42, %v1031_v2 }
 0x110   :  { %v1262_v11 = vsel %vm1130_vm2, %v1066_v57, %v1198_v3  ;;  %v1294_v12 = vsel %vm1162_vm3, %v1098_v58, %v1230_v4  ;;  %v1004_v13 = vmul.f32 %v1513_v5, %v1758_v40  ;;  %v1036_v14 = vmul.f32 %v1545_v6, %v1758_v40  ;;  %v557_v15 = vpop.f32.mrf.mxu0  ;;  %v685_v16 = vpop.f32.mrf.mxu1 }
 0x111   :  { %1326 = vst [vmem:[#allocation9] sm:$0xff] %v1262_v11  ;;  %1358 = vst [vmem:[#allocation9 + $0x100] sm:$0xff] %v1294_v12  ;;  %vm1133_vm4 = vcmp.gt.f32.partialorder %v1069_v7, 0.0  ;;  %v1201_v17 = vmul.f32 %v1764_v46, %v1069_v7  ;;  %vm1165_vm5 = vcmp.gt.f32.partialorder %v1101_v8, 0.0  ;;  %v1233_v18 = vmul.f32 %v1764_v46, %v1101_v8 }
 0x112   :  { %vm1131_vm6 = vcmp.gt.f32.partialorder %v1067_v9, 0.0  ;;  %v1199_v19 = vmul.f32 %v1764_v46, %v1067_v9  ;;  %vm1163_vm7 = vcmp.gt.f32.partialorder %v1099_v10, 0.0  ;;  %v1231_v20 = vmul.f32 %v1764_v46, %v1099_v10  ;;  %v1514_v21 = vpop.f32.mrf.mxu0  ;;  %v1546_v22 = vpop.f32.mrf.mxu1 }
 0x113   :  { %v1265_v23 = vsel %vm1133_vm4, %v1069_v7, %v1201_v17  ;;  %v1297_v24 = vsel %vm1165_vm5, %v1101_v8, %v1233_v18  ;;  %v1072_v25 = vadd.f32 %v1760_v42, %v1004_v13  ;;  %v1104_v26 = vadd.f32 %v1760_v42, %v1036_v14 }
 0x114   :  { %1329 = vst [vmem:[#allocation9 + $0x18] sm:$0xff] %v1265_v23  ;;  %1361 = vst [vmem:[#allocation9 + $0x118] sm:$0xff] %v1297_v24  ;;  %v1263_v27 = vsel %vm1131_vm6, %v1067_v9, %v1199_v19  ;;  %v1295_v28 = vsel %vm1163_vm7, %v1099_v10, %v1231_v20  ;;  %v1002_v29 = vmul.f32 %v1758_v40, %v557_v15  ;;  %v560_v31 = vpop.f32.mrf.mxu0  ;;  %v688_v32 = vpop.f32.mrf.mxu1 }
 0x115   :  { %v1034_v30 = vmul.f32 %v1758_v40, %v685_v16  ;;  %1327 = vst [vmem:[#allocation9 + $0x8] sm:$0xff] %v1263_v27  ;;  %1359 = vst [vmem:[#allocation9 + $0x108] sm:$0xff] %v1295_v28  ;;  %vm1136_vm8 = vcmp.gt.f32.partialorder %v1072_v25, 0.0  ;;  %v1204_v33 = vmul.f32 %v1764_v46, %v1072_v25  ;;  %vm1168_vm9 = vcmp.gt.f32.partialorder %v1104_v26, 0.0 }
 0x116   :  { %v1236_v34 = vmul.f32 %v1764_v46, %v1104_v26  ;;  %v1070_v35 = vadd.f32 %v1760_v42, %v1002_v29  ;;  %v1005_v37 = vmul.f32 %v1514_v21, %v1758_v40  ;;  %v1037_v38 = vmul.f32 %v1546_v22, %v1758_v40  ;;  %v1517_v39 = vpop.f32.mrf.mxu0  ;;  %v1549_v41 = vpop.f32.mrf.mxu1 }
 0x117   :  { %v1102_v36 = vadd.f32 %v1760_v42, %v1034_v30  ;;  %v1268_v43 = vsel %vm1136_vm8, %v1072_v25, %v1204_v33  ;;  %v1003_v45 = vmul.f32 %v1758_v40, %v560_v31  ;;  %v1035_v47 = vmul.f32 %v1758_v40, %v688_v32 }
 0x118   :  { %v1300_v44 = vsel %vm1168_vm9, %v1104_v26, %v1236_v34  ;;  %1332 = vst [vmem:[#allocation9 + $0x30] sm:$0xff] %v1268_v43  ;;  %vm1134_vm10 = vcmp.gt.f32.partialorder %v1070_v35, 0.0  ;;  %v1202_v48 = vmul.f32 %v1764_v46, %v1070_v35  ;;  %v573_v50 = vpop.f32.mrf.mxu0  ;;  %v701_v51 = vpop.f32.mrf.mxu1  ;;  %v1073_v52 = vadd.f32 %v1760_v42, %v1005_v37 }
 0x119   :  { %1364 = vst [vmem:[#allocation9 + $0x130] sm:$0xff] %v1300_v44  ;;  %vm1166_vm11 = vcmp.gt.f32.partialorder %v1102_v36, 0.0  ;;  %v1234_v49 = vmul.f32 %v1764_v46, %v1102_v36  ;;  %v1105_v53 = vadd.f32 %v1760_v42, %v1037_v38  ;;  %v1071_v54 = vadd.f32 %v1760_v42, %v1003_v45 }
 0x11a   :  { %v1103_v55 = vadd.f32 %v1760_v42, %v1035_v47  ;;  %v1266_v56 = vsel %vm1134_vm10, %v1070_v35, %v1202_v48  ;;  %v1008_v58 = vmul.f32 %v1517_v39, %v1758_v40  ;;  %v1040_v59 = vmul.f32 %v1549_v41, %v1758_v40  ;;  %v1518_v60 = vpop.f32.mrf.mxu0  ;;  %v1550_v61 = vpop.f32.mrf.mxu1 }
 0x11b   :  { %v1298_v57 = vsel %vm1166_vm11, %v1102_v36, %v1234_v49  ;;  %1330 = vst [vmem:[#allocation9 + $0x20] sm:$0xff] %v1266_v56  ;;  %vm1137_vm12 = vcmp.gt.f32.partialorder %v1073_v52, 0.0  ;;  %v1205_v62 = vmul.f32 %v1764_v46, %v1073_v52  ;;  %vm1169_vm13 = vcmp.gt.f32.partialorder %v1105_v53, 0.0 }
 0x11c   :  { %1362 = vst [vmem:[#allocation9 + $0x120] sm:$0xff] %v1298_v57  ;;  %v1237_v63 = vmul.f32 %v1764_v46, %v1105_v53  ;;  %vm1135_vm14 = vcmp.gt.f32.partialorder %v1071_v54, 0.0  ;;  %v1203_v0 = vmul.f32 %v1764_v46, %v1071_v54  ;;  %vm1167_vm15 = vcmp.gt.f32.partialorder %v1103_v55, 0.0  ;;  %v576_v2 = vpop.f32.mrf.mxu0  ;;  %v704_v3 = vpop.f32.mrf.mxu1 }
 0x11d   :  { %v1235_v1 = vmul.f32 %v1764_v46, %v1103_v55  ;;  %v1269_v4 = vsel %vm1137_vm12, %v1073_v52, %v1205_v62  ;;  %v1076_v6 = vadd.f32 %v1760_v42, %v1008_v58  ;;  %v1108_v7 = vadd.f32 %v1760_v42, %v1040_v59 }
 0x11e   :  { %v1301_v5 = vsel %vm1169_vm13, %v1105_v53, %v1237_v63  ;;  %1333 = vst [vmem:[#allocation9 + $0x38] sm:$0xff] %v1269_v4  ;;  %v1267_v8 = vsel %vm1135_vm14, %v1071_v54, %v1203_v0  ;;  %v1006_v10 = vmul.f32 %v1758_v40, %v573_v50  ;;  %v1038_v11 = vmul.f32 %v1758_v40, %v701_v51  ;;  %v1521_v12 = vpop.f32.mrf.mxu0  ;;  %v1553_v13 = vpop.f32.mrf.mxu1 }
 0x11f   :  { %1365 = vst [vmem:[#allocation9 + $0x138] sm:$0xff] %v1301_v5  ;;  %v1299_v9 = vsel %vm1167_vm15, %v1103_v55, %v1235_v1  ;;  %1331 = vst [vmem:[#allocation9 + $0x28] sm:$0xff] %v1267_v8  ;;  %vm1140_vm0 = vcmp.gt.f32.partialorder %v1076_v6, 0.0  ;;  %v1208_v14 = vmul.f32 %v1764_v46, %v1076_v6  ;;  %vm1172_vm1 = vcmp.gt.f32.partialorder %v1108_v7, 0.0 }
 0x120   :  { %1363 = vst [vmem:[#allocation9 + $0x128] sm:$0xff] %v1299_v9  ;;  %v1240_v15 = vmul.f32 %v1764_v46, %v1108_v7  ;;  %v1074_v16 = vadd.f32 %v1760_v42, %v1006_v10  ;;  %v1106_v17 = vadd.f32 %v1760_v42, %v1038_v11  ;;  %v1009_v18 = vmul.f32 %v1518_v60, %v1758_v40  ;;  %v589_v20 = vpop.f32.mrf.mxu0  ;;  %v717_v21 = vpop.f32.mrf.mxu1 }
 0x121   :  { %v1041_v19 = vmul.f32 %v1550_v61, %v1758_v40  ;;  %v1272_v22 = vsel %vm1140_vm0, %v1076_v6, %v1208_v14  ;;  %v1007_v24 = vmul.f32 %v1758_v40, %v576_v2  ;;  %v1039_v25 = vmul.f32 %v1758_v40, %v704_v3 }
 0x122   :  { %v1304_v23 = vsel %vm1172_vm1, %v1108_v7, %v1240_v15  ;;  %1336 = vst [vmem:[#allocation9 + $0x50] sm:$0xff] %v1272_v22  ;;  %vm1138_vm2 = vcmp.gt.f32.partialorder %v1074_v16, 0.0  ;;  %v1206_v26 = vmul.f32 %v1764_v46, %v1074_v16  ;;  %vm1170_vm3 = vcmp.gt.f32.partialorder %v1106_v17, 0.0  ;;  %v1522_v28 = vpop.f32.mrf.mxu0  ;;  %v1554_v29 = vpop.f32.mrf.mxu1 }
 0x123   :  { %1368 = vst [vmem:[#allocation9 + $0x150] sm:$0xff] %v1304_v23  ;;  %v1238_v27 = vmul.f32 %v1764_v46, %v1106_v17  ;;  %v1077_v30 = vadd.f32 %v1760_v42, %v1009_v18  ;;  %v1109_v31 = vadd.f32 %v1760_v42, %v1041_v19  ;;  %v1075_v32 = vadd.f32 %v1760_v42, %v1007_v24 }
 0x124   :  { %v1107_v33 = vadd.f32 %v1760_v42, %v1039_v25  ;;  %v1270_v34 = vsel %vm1138_vm2, %v1074_v16, %v1206_v26  ;;  %v1012_v36 = vmul.f32 %v1521_v12, %v1758_v40  ;;  %v1044_v37 = vmul.f32 %v1553_v13, %v1758_v40  ;;  %v592_v38 = vpop.f32.mrf.mxu0  ;;  %v720_v39 = vpop.f32.mrf.mxu1 }
 0x125   :  { %v1302_v35 = vsel %vm1170_vm3, %v1106_v17, %v1238_v27  ;;  %1334 = vst [vmem:[#allocation9 + $0x40] sm:$0xff] %v1270_v34  ;;  %vm1141_vm4 = vcmp.gt.f32.partialorder %v1077_v30, 0.0  ;;  %v1209_v41 = vmul.f32 %v1764_v46, %v1077_v30  ;;  %vm1173_vm5 = vcmp.gt.f32.partialorder %v1109_v31, 0.0 }
 0x126   :  { %1366 = vst [vmem:[#allocation9 + $0x140] sm:$0xff] %v1302_v35  ;;  %v1241_v43 = vmul.f32 %v1764_v46, %v1109_v31  ;;  %vm1139_vm6 = vcmp.gt.f32.partialorder %v1075_v32, 0.0  ;;  %v1207_v44 = vmul.f32 %v1764_v46, %v1075_v32  ;;  %vm1171_vm7 = vcmp.gt.f32.partialorder %v1107_v33, 0.0  ;;  %v1525_v47 = vpop.f32.mrf.mxu0  ;;  %v1557_v48 = vpop.f32.mrf.mxu1 }
 0x127   :  { %v1239_v45 = vmul.f32 %v1764_v46, %v1107_v33  ;;  %v1273_v49 = vsel %vm1141_vm4, %v1077_v30, %v1209_v41  ;;  %v1080_v51 = vadd.f32 %v1760_v42, %v1012_v36  ;;  %v1112_v52 = vadd.f32 %v1760_v42, %v1044_v37 }
 0x128   :  { %v1305_v50 = vsel %vm1173_vm5, %v1109_v31, %v1241_v43  ;;  %1337 = vst [vmem:[#allocation9 + $0x58] sm:$0xff] %v1273_v49  ;;  %v1271_v53 = vsel %vm1139_vm6, %v1075_v32, %v1207_v44  ;;  %v1010_v55 = vmul.f32 %v1758_v40, %v589_v20  ;;  %v1042_v56 = vmul.f32 %v1758_v40, %v717_v21  ;;  %v605_v57 = vpop.f32.mrf.mxu0  ;;  %v733_v58 = vpop.f32.mrf.mxu1 }
 0x129   :  { %1369 = vst [vmem:[#allocation9 + $0x158] sm:$0xff] %v1305_v50  ;;  %v1303_v54 = vsel %vm1171_vm7, %v1107_v33, %v1239_v45  ;;  %1335 = vst [vmem:[#allocation9 + $0x48] sm:$0xff] %v1271_v53  ;;  %vm1144_vm8 = vcmp.gt.f32.partialorder %v1080_v51, 0.0  ;;  %v1212_v59 = vmul.f32 %v1764_v46, %v1080_v51  ;;  %vm1176_vm9 = vcmp.gt.f32.partialorder %v1112_v52, 0.0 }
 0x12a   :  { %1367 = vst [vmem:[#allocation9 + $0x148] sm:$0xff] %v1303_v54  ;;  %v1244_v60 = vmul.f32 %v1764_v46, %v1112_v52  ;;  %v1078_v61 = vadd.f32 %v1760_v42, %v1010_v55  ;;  %v1110_v62 = vadd.f32 %v1760_v42, %v1042_v56  ;;  %v1013_v63 = vmul.f32 %v1522_v28, %v1758_v40  ;;  %v1526_v1 = vpop.f32.mrf.mxu0  ;;  %v1558_v2 = vpop.f32.mrf.mxu1 }
 0x12b   :  { %v1045_v0 = vmul.f32 %v1554_v29, %v1758_v40  ;;  %v1276_v3 = vsel %vm1144_vm8, %v1080_v51, %v1212_v59  ;;  %v1011_v5 = vmul.f32 %v1758_v40, %v592_v38  ;;  %v1043_v6 = vmul.f32 %v1758_v40, %v720_v39 }
 0x12c   :  { %v1308_v4 = vsel %vm1176_vm9, %v1112_v52, %v1244_v60  ;;  %1340 = vst [vmem:[#allocation9 + $0x70] sm:$0xff] %v1276_v3  ;;  %vm1142_vm10 = vcmp.gt.f32.partialorder %v1078_v61, 0.0  ;;  %v1210_v7 = vmul.f32 %v1764_v46, %v1078_v61  ;;  %vm1174_vm11 = vcmp.gt.f32.partialorder %v1110_v62, 0.0  ;;  %v608_v9 = vpop.f32.mrf.mxu0  ;;  %v736_v10 = vpop.f32.mrf.mxu1 }
 0x12d   :  { %1372 = vst [vmem:[#allocation9 + $0x170] sm:$0xff] %v1308_v4  ;;  %v1242_v8 = vmul.f32 %v1764_v46, %v1110_v62  ;;  %v1081_v11 = vadd.f32 %v1760_v42, %v1013_v63  ;;  %v1113_v12 = vadd.f32 %v1760_v42, %v1045_v0  ;;  %v1079_v13 = vadd.f32 %v1760_v42, %v1011_v5 }
 0x12e   :  { %v1111_v14 = vadd.f32 %v1760_v42, %v1043_v6  ;;  %v1274_v15 = vsel %vm1142_vm10, %v1078_v61, %v1210_v7  ;;  %v1016_v17 = vmul.f32 %v1525_v47, %v1758_v40  ;;  %v1048_v18 = vmul.f32 %v1557_v48, %v1758_v40  ;;  %v1529_v19 = vpop.f32.mrf.mxu0  ;;  %v1561_v20 = vpop.f32.mrf.mxu1 }
 0x12f   :  { %v1306_v16 = vsel %vm1174_vm11, %v1110_v62, %v1242_v8  ;;  %1338 = vst [vmem:[#allocation9 + $0x60] sm:$0xff] %v1274_v15  ;;  %vm1145_vm12 = vcmp.gt.f32.partialorder %v1081_v11, 0.0  ;;  %v1213_v21 = vmul.f32 %v1764_v46, %v1081_v11  ;;  %vm1177_vm13 = vcmp.gt.f32.partialorder %v1113_v12, 0.0 }
 0x130   :  { %1370 = vst [vmem:[#allocation9 + $0x160] sm:$0xff] %v1306_v16  ;;  %v1245_v22 = vmul.f32 %v1764_v46, %v1113_v12  ;;  %vm1143_vm14 = vcmp.gt.f32.partialorder %v1079_v13, 0.0  ;;  %v1211_v23 = vmul.f32 %v1764_v46, %v1079_v13  ;;  %vm1175_vm15 = vcmp.gt.f32.partialorder %v1111_v14, 0.0  ;;  %v1862_v25 = vpop.f32.mrf.mxu0  ;;  %v1864_v26 = vpop.f32.mrf.mxu1 }
 0x131   :  { %v1243_v24 = vmul.f32 %v1764_v46, %v1111_v14  ;;  %v1277_v27 = vsel %vm1145_vm12, %v1081_v11, %v1213_v21  ;;  %v1084_v29 = vadd.f32 %v1760_v42, %v1016_v17  ;;  %v1116_v30 = vadd.f32 %v1760_v42, %v1048_v18 }
 0x132   :  { %v1309_v28 = vsel %vm1177_vm13, %v1113_v12, %v1245_v22  ;;  %1341 = vst [vmem:[#allocation9 + $0x78] sm:$0xff] %v1277_v27  ;;  %v1275_v31 = vsel %vm1143_vm14, %v1079_v13, %v1211_v23  ;;  %v1014_v33 = vmul.f32 %v1758_v40, %v605_v57  ;;  %v1046_v34 = vmul.f32 %v1758_v40, %v733_v58  ;;  %v1870_v35 = vpop.f32.mrf.mxu0  ;;  %v1872_v36 = vpop.f32.mrf.mxu1 }
 0x133   :  { %1373 = vst [vmem:[#allocation9 + $0x178] sm:$0xff] %v1309_v28  ;;  %v1307_v32 = vsel %vm1175_vm15, %v1111_v14, %v1243_v24  ;;  %1339 = vst [vmem:[#allocation9 + $0x68] sm:$0xff] %v1275_v31  ;;  %vm1148_vm0 = vcmp.gt.f32.partialorder %v1084_v29, 0.0  ;;  %v1216_v37 = vmul.f32 %v1764_v46, %v1084_v29  ;;  %vm1180_vm1 = vcmp.gt.f32.partialorder %v1116_v30, 0.0 }
 0x134   :  { %1371 = vst [vmem:[#allocation9 + $0x168] sm:$0xff] %v1307_v32  ;;  %v1248_v38 = vmul.f32 %v1764_v46, %v1116_v30  ;;  %v1082_v39 = vadd.f32 %v1760_v42, %v1014_v33  ;;  %v1114_v41 = vadd.f32 %v1760_v42, %v1046_v34  ;;  %v1017_v43 = vmul.f32 %v1526_v1, %v1758_v40  ;;  %v624_v45 = vpop.f32.mrf.mxu0  ;;  %v752_v47 = vpop.f32.mrf.mxu1 }
 0x135   :  { %v1049_v44 = vmul.f32 %v1558_v2, %v1758_v40  ;;  %v1280_v48 = vsel %vm1148_vm0, %v1084_v29, %v1216_v37  ;;  %v1015_v50 = vmul.f32 %v1758_v40, %v608_v9  ;;  %v1047_v51 = vmul.f32 %v1758_v40, %v736_v10 }
 0x136   :  { %v1312_v49 = vsel %vm1180_vm1, %v1116_v30, %v1248_v38  ;;  %1344 = vst [vmem:[#allocation9 + $0x90] sm:$0xff] %v1280_v48  ;;  %vm1146_vm2 = vcmp.gt.f32.partialorder %v1082_v39, 0.0  ;;  %v1214_v52 = vmul.f32 %v1764_v46, %v1082_v39  ;;  %vm1178_vm3 = vcmp.gt.f32.partialorder %v1114_v41, 0.0  ;;  %v1884_v54 = vpop.f32.mrf.mxu0  ;;  %v1565_v55 = vpop.f32.mrf.mxu1 }
 0x137   :  { %1376 = vst [vmem:[#allocation9 + $0x190] sm:$0xff] %v1312_v49  ;;  %v1246_v53 = vmul.f32 %v1764_v46, %v1114_v41  ;;  %v1085_v56 = vadd.f32 %v1760_v42, %v1017_v43  ;;  %v1117_v57 = vadd.f32 %v1760_v42, %v1049_v44  ;;  %v1083_v58 = vadd.f32 %v1760_v42, %v1015_v50 }
 0x138   :  { %v1115_v59 = vadd.f32 %v1760_v42, %v1047_v51  ;;  %v1278_v60 = vsel %vm1146_vm2, %v1082_v39, %v1214_v52  ;;  %v1020_v62 = vmul.f32 %v1529_v19, %v1758_v40  ;;  %v1052_v63 = vmul.f32 %v1561_v20, %v1758_v40  ;;  %v1892_v0 = vpop.f32.mrf.mxu0  ;;  %v1894_v1 = vpop.f32.mrf.mxu1 }
 0x139   :  { %v1310_v61 = vsel %vm1178_vm3, %v1114_v41, %v1246_v53  ;;  %1342 = vst [vmem:[#allocation9 + $0x80] sm:$0xff] %v1278_v60  ;;  %vm1149_vm4 = vcmp.gt.f32.partialorder %v1085_v56, 0.0  ;;  %v1217_v2 = vmul.f32 %v1764_v46, %v1085_v56  ;;  %vm1181_vm5 = vcmp.gt.f32.partialorder %v1117_v57, 0.0 }
 0x13a   :  { %1374 = vst [vmem:[#allocation9 + $0x180] sm:$0xff] %v1310_v61  ;;  %v1249_v3 = vmul.f32 %v1764_v46, %v1117_v57  ;;  %vm1147_vm6 = vcmp.gt.f32.partialorder %v1083_v58, 0.0  ;;  %v1215_v4 = vmul.f32 %v1764_v46, %v1083_v58  ;;  %vm1179_vm7 = vcmp.gt.f32.partialorder %v1115_v59, 0.0  ;;  %v1534_v14 = vpop.f32.mrf.mxu0  ;;  %v1566_v15 = vpop.f32.mrf.mxu1 }
 0x13b   :  { %v1247_v5 = vmul.f32 %v1764_v46, %v1115_v59  ;;  %v1281_v6 = vsel %vm1149_vm4, %v1085_v56, %v1217_v2  ;;  %v1088_v8 = vadd.f32 %v1760_v42, %v1020_v62  ;;  %v1120_v9 = vadd.f32 %v1760_v42, %v1052_v63 }
 0x13c   :  { %v1313_v7 = vsel %vm1181_vm5, %v1117_v57, %v1249_v3  ;;  %1345 = vst [vmem:[#allocation9 + $0x98] sm:$0xff] %v1281_v6  ;;  %v1279_v10 = vsel %vm1147_vm6, %v1083_v58, %v1215_v4  ;;  %v1018_v12 = vmul.f32 %v1758_v40, %v1862_v25  ;;  %v1050_v13 = vmul.f32 %v1758_v40, %v1864_v26  ;;  %v640_v28 = vpop.f32.mrf.mxu0  ;;  %v768_v29 = vpop.f32.mrf.mxu1 }
 0x13d   :  { %1377 = vst [vmem:[#allocation9 + $0x198] sm:$0xff] %v1313_v7  ;;  %v1311_v11 = vsel %vm1179_vm7, %v1115_v59, %v1247_v5  ;;  %1343 = vst [vmem:[#allocation9 + $0x88] sm:$0xff] %v1279_v10  ;;  %vm1152_vm8 = vcmp.gt.f32.partialorder %v1088_v8, 0.0  ;;  %v1220_v16 = vmul.f32 %v1764_v46, %v1088_v8  ;;  %vm1184_vm9 = vcmp.gt.f32.partialorder %v1120_v9, 0.0 }
 0x13e   :  { %1375 = vst [vmem:[#allocation9 + $0x188] sm:$0xff] %v1311_v11  ;;  %v1252_v17 = vmul.f32 %v1764_v46, %v1120_v9  ;;  %v1086_v18 = vadd.f32 %v1760_v42, %v1018_v12  ;;  %v1118_v19 = vadd.f32 %v1760_v42, %v1050_v13  ;;  %v1021_v20 = vmul.f32 %v1870_v35, %v1758_v40  ;;  %v1537_v44 = vpop.f32.mrf.mxu0 }
 0x13f   :  { %v1053_v21 = vmul.f32 %v1872_v36, %v1758_v40  ;;  %v1284_v22 = vsel %vm1152_vm8, %v1088_v8, %v1220_v16  ;;  %v1019_v24 = vmul.f32 %v1758_v40, %v624_v45  ;;  %v1051_v25 = vmul.f32 %v1758_v40, %v752_v47  ;;  %v1569_v45 = vpop.f32.mrf.mxu1 }
 0x140   :  { %v1316_v23 = vsel %vm1184_vm9, %v1120_v9, %v1252_v17  ;;  %1348 = vst [vmem:[#allocation9 + $0xb0] sm:$0xff] %v1284_v22  ;;  %vm1150_vm10 = vcmp.gt.f32.partialorder %v1086_v18, 0.0  ;;  %v1218_v26 = vmul.f32 %v1764_v46, %v1086_v18  ;;  %vm1182_vm11 = vcmp.gt.f32.partialorder %v1118_v19, 0.0  ;;  %v653_v61 = vpop.f32.mrf.mxu0 }
 0x141   :  { %1380 = vst [vmem:[#allocation9 + $0x1b0] sm:$0xff] %v1316_v23  ;;  %v1250_v27 = vmul.f32 %v1764_v46, %v1118_v19  ;;  %v1089_v30 = vadd.f32 %v1760_v42, %v1021_v20  ;;  %v1121_v31 = vadd.f32 %v1760_v42, %v1053_v21  ;;  %v1087_v32 = vadd.f32 %v1760_v42, %v1019_v24  ;;  %v781_v62 = vpop.f32.mrf.mxu1 }
 0x142   :  { %v1119_v33 = vadd.f32 %v1760_v42, %v1051_v25  ;;  %v1282_v34 = vsel %vm1150_vm10, %v1086_v18, %v1218_v26  ;;  %v1024_v36 = vmul.f32 %v1884_v54, %v1758_v40  ;;  %v1056_v37 = vmul.f32 %v1565_v55, %v1758_v40  ;;  %v1538_v13 = vpop.f32.mrf.mxu0 }
 0x143   :  { %v1314_v35 = vsel %vm1182_vm11, %v1118_v19, %v1250_v27  ;;  %1346 = vst [vmem:[#allocation9 + $0xa0] sm:$0xff] %v1282_v34  ;;  %vm1153_vm12 = vcmp.gt.f32.partialorder %v1089_v30, 0.0  ;;  %v1221_v38 = vmul.f32 %v1764_v46, %v1089_v30  ;;  %vm1185_vm13 = vcmp.gt.f32.partialorder %v1121_v31, 0.0 }
 0x144   :  { %1378 = vst [vmem:[#allocation9 + $0x1a0] sm:$0xff] %v1314_v35  ;;  %v1253_v39 = vmul.f32 %v1764_v46, %v1121_v31  ;;  %vm1151_vm14 = vcmp.gt.f32.partialorder %v1087_v32, 0.0  ;;  %v1219_v41 = vmul.f32 %v1764_v46, %v1087_v32  ;;  %vm1183_vm15 = vcmp.gt.f32.partialorder %v1119_v33, 0.0  ;;  %v656_v27 = vpop.f32.mrf.mxu0 }
 0x145   :  { %v1251_v43 = vmul.f32 %v1764_v46, %v1119_v33  ;;  %v1285_v47 = vsel %vm1153_vm12, %v1089_v30, %v1221_v38  ;;  %v1092_v49 = vadd.f32 %v1760_v42, %v1024_v36  ;;  %v1124_v50 = vadd.f32 %v1760_v42, %v1056_v37 }
 0x146   :  { %v1317_v48 = vsel %vm1185_vm13, %v1121_v31, %v1253_v39  ;;  %1349 = vst [vmem:[#allocation9 + $0xb8] sm:$0xff] %v1285_v47  ;;  %v1283_v51 = vsel %vm1151_vm14, %v1087_v32, %v1219_v41  ;;  %v1022_v53 = vmul.f32 %v1758_v40, %v1892_v0  ;;  %v1054_v54 = vmul.f32 %v1758_v40, %v1894_v1 }
 0x147   :  { %1381 = vst [vmem:[#allocation9 + $0x1b8] sm:$0xff] %v1317_v48  ;;  %v1315_v52 = vsel %vm1183_vm15, %v1119_v33, %v1251_v43  ;;  %1347 = vst [vmem:[#allocation9 + $0xa8] sm:$0xff] %v1283_v51  ;;  %vm1156_vm0 = vcmp.gt.f32.partialorder %v1092_v49, 0.0  ;;  %v1224_v55 = vmul.f32 %v1764_v46, %v1092_v49  ;;  %vm1188_vm1 = vcmp.gt.f32.partialorder %v1124_v50, 0.0 }
 0x148   :  { %1379 = vst [vmem:[#allocation9 + $0x1a8] sm:$0xff] %v1315_v52  ;;  %v1256_v56 = vmul.f32 %v1764_v46, %v1124_v50  ;;  %v1090_v57 = vadd.f32 %v1760_v42, %v1022_v53  ;;  %v1122_v58 = vadd.f32 %v1760_v42, %v1054_v54  ;;  %v1025_v59 = vmul.f32 %v1534_v14, %v1758_v40  ;;  %v1570_v14 = vpop.f32.mrf.mxu1 }
 0x149   :  { %v1057_v60 = vmul.f32 %v1566_v15, %v1758_v40  ;;  %v1288_v63 = vsel %vm1156_vm0, %v1092_v49, %v1224_v55  ;;  %v1023_v1 = vmul.f32 %v1758_v40, %v640_v28  ;;  %v1055_v2 = vmul.f32 %v1758_v40, %v768_v29 }
 0x14a   :  { %v1320_v0 = vsel %vm1188_vm1, %v1124_v50, %v1256_v56  ;;  %1352 = vst [vmem:[#allocation9 + $0xd0] sm:$0xff] %v1288_v63  ;;  %vm1154_vm2 = vcmp.gt.f32.partialorder %v1090_v57, 0.0  ;;  %v1222_v3 = vmul.f32 %v1764_v46, %v1090_v57  ;;  %vm1186_vm3 = vcmp.gt.f32.partialorder %v1122_v58, 0.0  ;;  %v784_v28 = vpop.f32.mrf.mxu1 }
 0x14b   :  { %1384 = vst [vmem:[#allocation9 + $0x1d0] sm:$0xff] %v1320_v0  ;;  %v1254_v4 = vmul.f32 %v1764_v46, %v1122_v58  ;;  %v1093_v5 = vadd.f32 %v1760_v42, %v1025_v59  ;;  %v1125_v6 = vadd.f32 %v1760_v42, %v1057_v60  ;;  %v1091_v7 = vadd.f32 %v1760_v42, %v1023_v1 }
 0x14c   :  { %v1123_v8 = vadd.f32 %v1760_v42, %v1055_v2  ;;  %v1286_v9 = vsel %vm1154_vm2, %v1090_v57, %v1222_v3  ;;  %v1028_v11 = vmul.f32 %v1537_v44, %v1758_v40  ;;  %v1060_v12 = vmul.f32 %v1569_v45, %v1758_v40 }
 0x14d   :  { %v1318_v10 = vsel %vm1186_vm3, %v1122_v58, %v1254_v4  ;;  %1350 = vst [vmem:[#allocation9 + $0xc0] sm:$0xff] %v1286_v9  ;;  %vm1157_vm4 = vcmp.gt.f32.partialorder %v1093_v5, 0.0  ;;  %v1225_v15 = vmul.f32 %v1764_v46, %v1093_v5  ;;  %vm1189_vm5 = vcmp.gt.f32.partialorder %v1125_v6, 0.0 }
 0x14e   :  { %1382 = vst [vmem:[#allocation9 + $0x1c0] sm:$0xff] %v1318_v10  ;;  %v1257_v16 = vmul.f32 %v1764_v46, %v1125_v6  ;;  %vm1155_vm6 = vcmp.gt.f32.partialorder %v1091_v7, 0.0  ;;  %v1223_v17 = vmul.f32 %v1764_v46, %v1091_v7  ;;  %vm1187_vm7 = vcmp.gt.f32.partialorder %v1123_v8, 0.0 }
 0x14f   :  { %v1255_v18 = vmul.f32 %v1764_v46, %v1123_v8  ;;  %v1289_v19 = vsel %vm1157_vm4, %v1093_v5, %v1225_v15  ;;  %v1096_v21 = vadd.f32 %v1760_v42, %v1028_v11  ;;  %v1128_v22 = vadd.f32 %v1760_v42, %v1060_v12 }
 0x150   :  { %v1321_v20 = vsel %vm1189_vm5, %v1125_v6, %v1257_v16  ;;  %1353 = vst [vmem:[#allocation9 + $0xd8] sm:$0xff] %v1289_v19  ;;  %v1287_v23 = vsel %vm1155_vm6, %v1091_v7, %v1223_v17  ;;  %v1026_v25 = vmul.f32 %v1758_v40, %v653_v61  ;;  %v1058_v26 = vmul.f32 %v1758_v40, %v781_v62 }
 0x151   :  { %1385 = vst [vmem:[#allocation9 + $0x1d8] sm:$0xff] %v1321_v20  ;;  %v1319_v24 = vsel %vm1187_vm7, %v1123_v8, %v1255_v18  ;;  %1351 = vst [vmem:[#allocation9 + $0xc8] sm:$0xff] %v1287_v23  ;;  %vm1160_vm8 = vcmp.gt.f32.partialorder %v1096_v21, 0.0  ;;  %v1228_v29 = vmul.f32 %v1764_v46, %v1096_v21  ;;  %vm1192_vm9 = vcmp.gt.f32.partialorder %v1128_v22, 0.0 }
 0x152   :  { %1383 = vst [vmem:[#allocation9 + $0x1c8] sm:$0xff] %v1319_v24  ;;  %v1260_v30 = vmul.f32 %v1764_v46, %v1128_v22  ;;  %v1094_v31 = vadd.f32 %v1760_v42, %v1026_v25  ;;  %v1126_v32 = vadd.f32 %v1760_v42, %v1058_v26  ;;  %v1029_v33 = vmul.f32 %v1538_v13, %v1758_v40 }
 0x153   :  { %v1061_v34 = vmul.f32 %v1570_v14, %v1758_v40  ;;  %v1292_v35 = vsel %vm1160_vm8, %v1096_v21, %v1228_v29  ;;  %v1027_v37 = vmul.f32 %v1758_v40, %v656_v27  ;;  %v1059_v38 = vmul.f32 %v1758_v40, %v784_v28 }
 0x154   :  { %v1324_v36 = vsel %vm1192_vm9, %v1128_v22, %v1260_v30  ;;  %1356 = vst [vmem:[#allocation9 + $0xf0] sm:$0xff] %v1292_v35  ;;  %vm1158_vm10 = vcmp.gt.f32.partialorder %v1094_v31, 0.0  ;;  %v1226_v39 = vmul.f32 %v1764_v46, %v1094_v31  ;;  %vm1190_vm11 = vcmp.gt.f32.partialorder %v1126_v32, 0.0 }
 0x155   :  { %1388 = vst [vmem:[#allocation9 + $0x1f0] sm:$0xff] %v1324_v36  ;;  %v1258_v41 = vmul.f32 %v1764_v46, %v1126_v32  ;;  %v1097_v43 = vadd.f32 %v1760_v42, %v1029_v33  ;;  %v1129_v44 = vadd.f32 %v1760_v42, %v1061_v34  ;;  %v1095_v45 = vadd.f32 %v1760_v42, %v1027_v37 }
 0x156   :  { %v1127_v47 = vadd.f32 %v1760_v42, %v1059_v38  ;;  %v1290_v48 = vsel %vm1158_vm10, %v1094_v31, %v1226_v39 }
 0x157   :  { %v1322_v49 = vsel %vm1190_vm11, %v1126_v32, %v1258_v41  ;;  %1354 = vst [vmem:[#allocation9 + $0xe0] sm:$0xff] %v1290_v48  ;;  %vm1161_vm12 = vcmp.gt.f32.partialorder %v1097_v43, 0.0  ;;  %v1229_v40 = vmul.f32 %v1764_v46, %v1097_v43  ;;  %vm1193_vm13 = vcmp.gt.f32.partialorder %v1129_v44, 0.0 }
 0x158   :  { %1386 = vst [vmem:[#allocation9 + $0x1e0] sm:$0xff] %v1322_v49  ;;  %v1261_v50 = vmul.f32 %v1764_v46, %v1129_v44  ;;  %vm1159_vm14 = vcmp.gt.f32.partialorder %v1095_v45, 0.0  ;;  %v1227_v51 = vmul.f32 %v1764_v46, %v1095_v45  ;;  %vm1191_vm15 = vcmp.gt.f32.partialorder %v1127_v47, 0.0 }
 0x159   :  { %v1259_v52 = vmul.f32 %v1764_v46, %v1127_v47  ;;  %v1293_v53 = vsel %vm1161_vm12, %v1097_v43, %v1229_v40 }
 0x15a   :  { %v1325_v42 = vsel %vm1193_vm13, %v1129_v44, %v1261_v50  ;;  %1357 = vst [vmem:[#allocation9 + $0xf8] sm:$0xff] %v1293_v53  ;;  %v1291_v54 = vsel %vm1159_vm14, %v1095_v45, %v1227_v51 }
 0x15b   :  { %1389 = vst [vmem:[#allocation9 + $0x1f8] sm:$0xff] %v1325_v42  ;;  %v1323_v55 = vsel %vm1191_vm15, %v1127_v47, %v1259_v52  ;;  %1355 = vst [vmem:[#allocation9 + $0xe8] sm:$0xff] %v1291_v54 }
 0x15c   :  { %1387 = vst [vmem:[#allocation9 + $0x1e8] sm:$0xff] %v1323_v55 }
 0x15d   :  { %1706 = shalt.err (!%p1703_p5)
}
 0x15e   :  { %s1727_s29 = smov 128   ;;  %s1728_s30 = smov 8  }
 0x15f   :  { %1401 = dma.vmem_to_hbm [thread:$0]  %s1396_s2, 8192, %s1983_s3, [#allocation5], %s1727_s29, %s1727_s29, %s1728_s30  }
 0x160   :  { %1719 = dma.done.wait [#allocation5], 8192  }
 0x161   :  { %1720 = vsyncadd [#allocation5], 4294959104 }
 0x162   :  { %1405 = vsyncpa [#allocation4], 1 }
 0x163   :  { %1406 = vsyncpa [#allocation7], 1 }
 0x164   :  { %1407 = vsyncpa [#allocation5], 1 }

</bundles_post_ra>
